<compile_context>
chip_gen: v6e
topology: v6e:2x2x1
jax: 0.10.0
libtpu: 0.0.40
codegen_flags: <defaults>
</compile_context>

<pallas_src>
import math

import jax
import jax.numpy as jnp
from jax.experimental import pallas as pl
from jax.experimental.pallas import tpu as pltpu


_LANES = 128
_SUBLANES = 8
# Double-buffered in+out tile budget (fits comfortably under the 32 MiB
# scoped limit we request below on every generation, incl. v7x's 64 MiB
# physical per-TC VMEM).
_VMEM_BUDGET_BYTES = 16 * 1024 * 1024
_VMEM_LIMIT_BYTES = 32 * 1024 * 1024
_MAX_TILE_ROWS = 8192


def _round_up(n: int, m: int) -> int:
    return ((n + m - 1) // m) * m


# ----------------------------- kernels -------------------------------------


def _emb_kernel_direct(x_ref, tab_ref, o_ref):
    # x_ref: (TR, 1) f32; tab_ref: (2, W) resident [freq; phase]; o_ref: (TR, W)
    emb = x_ref[...] * tab_ref[0:1, :] + tab_ref[1:2, :]
    o_ref[...] = jnp.sin(emb).astype(o_ref.dtype)


def _emb_kernel_packed(x_ref, sel_ref, tab_ref, o_ref):
    # x_ref: (TR, rpg) compact timesteps; sel_ref: (rpg, 128) constant 0/1
    # selector (sel[j,k] = 1 iff k // dim == j); tab_ref: (2, 128) resident.
    # The selector matmul runs on the idle MXU -> in-kernel broadcast of x
    # across its dim-wide lane group, no repeated x slab in HBM.
    xw = jnp.dot(x_ref[...], sel_ref[...], preferred_element_type=jnp.float32)
    emb = xw * tab_ref[0:1, :] + tab_ref[1:2, :]
    o_ref[...] = jnp.sin(emb).astype(o_ref.dtype)


# ----------------------------- wrapper --------------------------------------


def _tables(dim: int):
    half = dim // 2
    scale = math.log(10000.0) / (half - 1)
    freqs = jnp.exp(jnp.arange(half, dtype=jnp.float32) * -scale)        # (half,)
    freq_row = jnp.concatenate([freqs, freqs])                            # (dim,)
    phase_row = jnp.concatenate(
        [jnp.zeros((half,), jnp.float32),
         jnp.full((half,), 0.5 * math.pi, dtype=jnp.float32)])            # (dim,)
    return freq_row, phase_row


def _pick_tile_rows(total_rows: int, out_w: int, in_w: int) -> int:
    if total_rows <= _SUBLANES:
        return total_rows                      # single block == full axis
    # Narrow inputs are lane-padded to 128 in VMEM; count that.
    per_row_bytes = 2 * 4 * (_round_up(out_w, _LANES) + _round_up(in_w, _LANES))
    tile = min(total_rows, _MAX_TILE_ROWS,
               max(_SUBLANES, _VMEM_BUDGET_BYTES // per_row_bytes))
    # v7x: make sure moderate/large batches produce >= 2 grid steps so the
    # "parallel" axis actually shards across both TensorCores.
    if total_rows > 64:
        tile = min(tile, _round_up(pl.cdiv(total_rows, 2), _SUBLANES))
    return max(_SUBLANES, (tile // _SUBLANES) * _SUBLANES)


def _run(x2d: jax.Array, table: jax.Array, sel, out_dtype):
    rows, in_w = x2d.shape
    w = table.shape[1]
    tile = _pick_tile_rows(rows, w, in_w)
    rows_pad = pl.cdiv(rows, tile) * tile
    if rows_pad != rows:
        # x2d is always the compact input (<= a few lanes wide) -> cheap pad.
        x2d = jnp.pad(x2d, ((0, rows_pad - rows), (0, 0)))

    in_specs = [pl.BlockSpec((tile, in_w), lambda i: (i, 0))]
    args = [x2d]
    if sel is not None:
        in_specs.append(pl.BlockSpec(sel.shape, lambda i: (0, 0)))   # resident
        args.append(sel)
        kernel = _emb_kernel_packed
    else:
        kernel = _emb_kernel_direct
    in_specs.append(pl.BlockSpec((2, w), lambda i: (0, 0)))          # resident table
    args.append(table)

    out = pl.pallas_call(
        kernel,
        out_shape=jax.ShapeDtypeStruct((rows_pad, w), out_dtype),
        grid_spec=pl.GridSpec(
            grid=(rows_pad // tile,),
            in_specs=in_specs,
            out_specs=pl.BlockSpec((tile, w), lambda i: (i, 0)),
        ),
        compiler_params=pltpu.CompilerParams(
            dimension_semantics=("parallel",),
            vmem_limit_bytes=_VMEM_LIMIT_BYTES,
        ),
    )(*args)
    return out, rows_pad


def sinusoidal_pos_emb(x: jax.Array, dim: int, out_dtype=jnp.float32) -> jax.Array:
    """x: (B,) float timesteps -> (B, dim) = [sin(x*f) | cos(x*f)]."""
    assert dim % 2 == 0 and dim >= 4, "dim must be even and >= 4"
    (B,) = x.shape
    xf = x.astype(jnp.float32)
    freq_row, phase_row = _tables(dim)

    if dim % _LANES == 0:
        # Natural lane-dense layout; compact (B, 1) x column.
        table = jnp.stack([freq_row, phase_row])                       # (2, dim)
        out, _ = _run(xf[:, None], table, None, out_dtype)
        return out[:B]

    if _LANES % dim == 0:
        # dim < 128: pack rpg = 128 // dim embeddings per 128-lane output row
        # (unmasked lane-dense stores).  x stays compact: (groups, rpg) f32,
        # expanded in-kernel by the constant selector matmul.
        rpg = _LANES // dim
        groups = _round_up(pl.cdiv(B, rpg), _SUBLANES)   # pad once, sublane-aligned
        b_pad = groups * rpg
        x_pad = jnp.pad(xf, (0, b_pad - B)) if b_pad != B else xf
        x_cmp = x_pad.reshape(groups, rpg)
        table = jnp.stack([jnp.tile(freq_row, rpg),
                           jnp.tile(phase_row, rpg)])                  # (2, 128)
        lane = jnp.arange(_LANES, dtype=jnp.int32)
        grp = jnp.arange(rpg, dtype=jnp.int32)
        sel = (lane[None, :] // dim == grp[:, None]).astype(jnp.float32)  # (rpg, 128)
        out, rows_pad = _run(x_cmp, table, sel, out_dtype)
        # Row-major buffer is identical; the reshape is free plumbing.
        return out.reshape(rows_pad * rpg, dim)[:B]

    # Fallback (dim neither a multiple nor a divisor of 128): correct, but the
    # output store may be lane-masked.
    table = jnp.stack([freq_row, phase_row])
    out, _ = _run(xf[:, None], table, None, out_dtype)
    return out[:B]


# ----------------------------- reference & demo -----------------------------


def _reference(x: jax.Array, dim: int) -> jax.Array:
    # Pure-JAX reference mirroring the PyTorch forward exactly.
    half = dim // 2
    emb = math.log(10000.0) / (half - 1)
    emb = jnp.exp(jnp.arange(half, dtype=jnp.float32) * -emb)
    emb = x.astype(jnp.float32)[:, None] * emb[None, :]
    return jnp.concatenate([jnp.sin(emb), jnp.cos(emb)], axis=-1)


if __name__ == "__main__":
    key = jax.random.PRNGKey(0)

    # 1) Small demo shape (diffusion timestep embedding): B=8, dim=32
    #    -> packed path with in-kernel selector-matmul broadcast.
    B, dim = 8, 32
    x = jax.random.uniform(key, (B,), dtype=jnp.float32, minval=0.0, maxval=1000.0)
    out = jax.block_until_ready(sinusoidal_pos_emb(x, dim))
    ref = _reference(x, dim)
    assert out.shape == (B, dim), out.shape
    # cos(t) computed as sin(t + pi/2): f32 phase add contributes ~|t|*eps
    # (~6e-5 absolute at t ~ 1e3) vs. calling cos directly.
    err = float(jnp.max(jnp.abs(out - ref)))
    assert jnp.allclose(out, ref, atol=2e-4, rtol=1e-3), err

    # 2) dim % 128 == 0 (natural lane-dense, compact-x column) path, f32.
    B2, dim2 = 64, 128
    x2 = jax.random.uniform(jax.random.PRNGKey(1), (B2,), dtype=jnp.float32,
                            minval=0.0, maxval=1000.0)
    out2 = jax.block_until_ready(sinusoidal_pos_emb(x2, dim2))
    ref2 = _reference(x2, dim2)
    assert out2.shape == (B2, dim2)
    err2 = float(jnp.max(jnp.abs(out2 - ref2)))
    assert jnp.allclose(out2, ref2, atol=2e-4, rtol=1e-3), err2

    # 3) Multi-group packed path with batch padding + trailing slice (B=200),
    #    stored directly in bf16 (halves HBM write bytes for the consumer).
    B3, dim3 = 200, 32
    x3 = jax.random.uniform(jax.random.PRNGKey(2), (B3,), dtype=jnp.float32,
                            minval=0.0, maxval=1000.0)
    out3 = jax.block_until_ready(sinusoidal_pos_emb(x3, dim3, out_dtype=jnp.bfloat16))
    ref3 = _reference(x3, dim3)
    assert out3.shape == (B3, dim3) and out3.dtype == jnp.bfloat16
    err3 = float(jnp.max(jnp.abs(out3.astype(jnp.float32) - ref3)))
    assert err3 < 1e-2, err3

    print("KERNEL_OK")
</pallas_src>

<mosaic_0001>
module attributes {stable_mosaic.version = 11 : i64} {
  func.func @_emb_kernel_packed(%arg0: i32, %arg1: memref<8x4xf32, #tpu.memory_space<vmem>>, %arg2: memref<4x128xf32, #tpu.memory_space<vmem>>, %arg3: memref<2x128xf32, #tpu.memory_space<vmem>>, %arg4: memref<8x128xf32, #tpu.memory_space<vmem>>) attributes {dimension_semantics = [#tpu.dimension_semantics<parallel>], iteration_bounds = array<i64: 1>, scalar_prefetch = 0 : i64, scratch_operands = 0 : i64, tpu.core_type = #tpu.core_type<tc>, window_params = [{transform_indices = @transform_0, window_bounds = array<i64: 8, 4>}, {pipeline_mode = #tpu.pipeline_mode<synchronous>, transform_indices = @transform_1, window_bounds = array<i64: 4, 128>}, {pipeline_mode = #tpu.pipeline_mode<synchronous>, transform_indices = @transform_2, window_bounds = array<i64: 2, 128>}, {transform_indices = @transform_3, window_bounds = array<i64: 8, 128>}]} {
    %c0 = arith.constant 0 : index
    %c0_0 = arith.constant 0 : index
    %0 = vector.load %arg1[%c0, %c0_0] : memref<8x4xf32, #tpu.memory_space<vmem>>, vector<8x4xf32>
    %c0_1 = arith.constant 0 : index
    %c0_2 = arith.constant 0 : index
    %1 = vector.load %arg2[%c0_1, %c0_2] : memref<4x128xf32, #tpu.memory_space<vmem>>, vector<4x128xf32>
    %cst = arith.constant dense<0.000000e+00> : vector<8x128xf32>
    %2 = tpu.matmul %0, %1, %cst {dimension_numbers = #tpu.dot_dimension_numbers<[1], [0], [0], [1], [0, 0, 1, 1], [], []>} : vector<8x4xf32>, vector<4x128xf32>, vector<8x128xf32> -> vector<8x128xf32>
    %c0_3 = arith.constant 0 : index
    %c0_4 = arith.constant 0 : index
    %3 = vector.load %arg3[%c0_3, %c0_4] : memref<2x128xf32, #tpu.memory_space<vmem>>, vector<1x128xf32>
    %4 = vector.broadcast %3 : vector<1x128xf32> to vector<8x128xf32>
    %5 = arith.mulf %2, %4 : vector<8x128xf32>
    %c1 = arith.constant 1 : index
    %c0_5 = arith.constant 0 : index
    %6 = vector.load %arg3[%c1, %c0_5] : memref<2x128xf32, #tpu.memory_space<vmem>>, vector<1x128xf32>
    %7 = vector.broadcast %6 : vector<1x128xf32> to vector<8x128xf32>
    %8 = arith.addf %5, %7 : vector<8x128xf32>
    %9 = math.sin %8 : vector<8x128xf32>
    %c0_6 = arith.constant 0 : index
    %c0_7 = arith.constant 0 : index
    %10 = vector.load %arg4[%c0_6, %c0_7] : memref<8x128xf32, #tpu.memory_space<vmem>>, vector<8x128xf32>
    tpu.vector_store %arg4[%c0_6, %c0_7], %9 {strides = array<i32>} : memref<8x128xf32, #tpu.memory_space<vmem>>, vector<8x128xf32>,
    return
  }
  func.func @transform_0(%arg0: i32) -> (i32, i32) {
    %c0_i32 = arith.constant 0 : i32
    %c0_i32_0 = arith.constant 0 : i32
    return %arg0, %c0_i32 : i32, i32
  }
  func.func @transform_1(%arg0: i32) -> (i32, i32) {
    %c0_i32 = arith.constant 0 : i32
    %c0_i32_0 = arith.constant 0 : i32
    %c0_i32_1 = arith.constant 0 : i32
    return %c0_i32, %c0_i32_0 : i32, i32
  }
  func.func @transform_2(%arg0: i32) -> (i32, i32) {
    %c0_i32 = arith.constant 0 : i32
    %c0_i32_0 = arith.constant 0 : i32
    %c0_i32_1 = arith.constant 0 : i32
    return %c0_i32, %c0_i32_0 : i32, i32
  }
  func.func @transform_3(%arg0: i32) -> (i32, i32) {
    %c0_i32 = arith.constant 0 : i32
    %c0_i32_0 = arith.constant 0 : i32
    return %arg0, %c0_i32 : i32, i32
  }
}

</mosaic_0001>

<bundles_post_ra>
// kernel: tpu_custom_call.1
= control target key start
LH: loop header
LB: loop body
LE: loop exit
PB: predicated region body
PF: predicated region fallthrough
CT: control target
= control target key end

     0   :  { %vm21_vm0 = vcmask 1043456   ;;  %v280_v2 = vmov 0.0   ;;  %vm281_vm1 = vmmov 0   ;;  %vm17_vm2 = vcmask 31744   ;;  %s345_s0 = inlined_call_operand.vmem [shape: f32[8,4], index: 0, kind: input, shape index: {}]   ;;  %s346_s1 = inlined_call_operand.vmem [shape: f32[4,128], index: 1, kind: input, shape index: {}]   ;;  %s347_s2 = inlined_call_operand.vmem [shape: f32[2,128], index: 2, kind: input, shape index: {}]   ;;  %s348_s3 = inlined_call_operand.hbm [shape: f32[8,128], index: 3, kind: output, shape index: {}]  }
   0x1   :  { %v16_v0 = vld [vmem:[%s346_s1] sm:$0xf]  ;;  %236 = vmatprep.subr.mxu0 %v280_v2  ;;  %238 = vmatprep.mubr.msk.f32.mxu0 %vm281_vm1, %v280_v2 }
   0x2   :  { %v15_v1 = vld [vmem:[%s345_s0] sm:$0xff] }
   0x3   :  { %8 = vsyncpa [#allocation3], 0  ;;  %237 = vmatpush3.msk.msra.mxu0 %vm21_vm0, %v16_v0  ;;  %v228_v3 = vld [vmem:[%s347_s2] ss:$0 sm:$0xff]  ;;  %v229_v5 = vld [vmem:[%s347_s2 + $0x1] ss:$0 sm:$0xff] }
   0x4   :  { %239 = vmatmul.mubr.msk.f32.vlgmr.msra.gmra.mxu0 %vm17_vm2, %v15_v1  ;;  %v282_v20 = vmov 2102212464   ;;  %v283_v22 = vmov 920167782   ;;  %v284_v26 = vmov 1326507024  }
   0x5   :  { %v285_v28 = vmov 683565275   ;;  %v286_v30 = vmov 2475754826   ;;  %v287_v33 = vmov 2131351028  }
   0x6   :  { %s288_s0 = smov [#allocation2]  }
   0x7   :  { %s218_s2 = sshll.u32 %s288_s0, 4  ;;  %s219_s2 = int_to_ptr.vmem [resolvable:$true] %s218_s2 }
   0x8   :  { %s258_s19 = scalar_lea.vmem %s219_s2, 128  ;;  %p263_p1 = scmp.lt.s32.totalorder %s219_s2, %s219_s2 }
   0x9   :  { %p259_p0 = scmp.ne.s32.totalorder %s219_s2, %s258_s19  ;;  %p264_p2 = scmp.lt.s32.totalorder %s258_s19, %s258_s19 }
   0xb   :  { %p265_p3 = por %p264_p2, %p263_p1 }
   0xd   :  { %p266_p4 = pnand %p265_p3, %p259_p0 }
  0xc4   :  { %v91_v4 = vpop.f32.mrf.mxu0 }
  0xc5   :  { %v100_v6 = vmul.f32 %v228_v3, %v91_v4 }
  0xc6   :  { %v240_v7 = vpop.f32.mrf.mxu0 }
  0xc7   :  { %v321_v8 = vadd.f32 %v229_v5, %v100_v6 }
  0xc9   :  { %v110_v9 = vand.u32 2139095040, %v321_v8  ;;  %v107_v10 = vand.u32 2147483647, %v321_v8  ;;  %vm109_vm10 = vcmp.lt.s32.totalorder %v321_v8, 0  ;;  %vm199_vm15 = vweird.f32 %v321_v8 }
  0xcb   :  { %v111_v11 = vshrl.u32 %v110_v9, 23  ;;  %v114_v13 = vand.u32 8388607, %v107_v10  ;;  %vm108_vm11 = vcmp.le.f32.partialorder %v107_v10, 0.7853982 }
  0xcd   :  { %v230_v12 = vadd.s32 4294967169, %v111_v11  ;;  %v115_v16 = vor.u32 8388608, %v114_v13 }
  0xcf   :  { %v117_v14 = vadd.s32 1, %v230_v12  ;;  %v155_v24 = vshll.u32 %v115_v16, 8 }
  0xd1   :  { %vm118_vm3 = vcmp.gt.s32.totalorder %v117_v14, 0 }
  0xd2   :  { %v119_v15 = vsel %vm118_vm3, %v117_v14, 0 }
  0xd3   :  { %v121_v17 = vand.u32 31, %v119_v15  ;;  %v120_v18 = vshrl.u32 %v119_v15, 5 }
  0xd5   :  { %v122_v19 = vsub.s32 32, %v121_v17  ;;  %v133_v21 = vshll.u32 %v282_v20, %v121_v17  ;;  %v136_v23 = vshll.u32 %v283_v22, %v121_v17  ;;  %v124_v29 = vshll.u32 %v285_v28, %v121_v17 }
  0xd6   :  { %v127_v32 = vshll.u32 %v286_v30, %v121_v17  ;;  %v130_v35 = vshll.u32 %v287_v33, %v121_v17  ;;  %vm142_vm4 = vcmp.lt.s32.totalorder %v120_v18, 4  ;;  %vm139_vm5 = vcmp.lt.s32.totalorder %v120_v18, 1 }
  0xd7   :  { %v134_v25 = vshrl.u32 %v283_v22, %v122_v19  ;;  %v137_v27 = vshrl.u32 %v284_v26, %v122_v19  ;;  %v125_v31 = vshrl.u32 %v286_v30, %v122_v19  ;;  %v128_v34 = vshrl.u32 %v287_v33, %v122_v19 }
  0xd8   :  { %v131_v36 = vshrl.u32 %v282_v20, %v122_v19  ;;  %v123_v40 = vshrl.u32 %v285_v28, %v122_v19  ;;  %vm140_vm6 = vcmp.lt.s32.totalorder %v120_v18, 2  ;;  %vm141_vm7 = vcmp.lt.s32.totalorder %v120_v18, 3 }
  0xd9   :  { %v135_v37 = vor.u32 %v134_v25, %v133_v21  ;;  %v138_v38 = vor.u32 %v137_v27, %v136_v23  ;;  %v126_v39 = vor.u32 %v125_v31, %v124_v29  ;;  %v129_v41 = vor.u32 %v128_v34, %v127_v32 }
  0xda   :  { %v132_v42 = vor.u32 %v131_v36, %v130_v35 }
  0xdb   :  { %v148_v43 = vsel %vm142_vm4, %v135_v37, 920167782  ;;  %v152_v44 = vsel %vm142_vm4, %v138_v38, 1326507024  ;;  %v147_v46 = vsel %vm139_vm5, %v126_v39, %v129_v41  ;;  %v143_v49 = vsel %vm139_vm5, %v123_v40, %v126_v39 }
  0xdc   :  { %v144_v45 = vsel %vm142_vm4, %v132_v42, 2102212464  ;;  %v149_v47 = vsel %vm141_vm7, %v132_v42, %v148_v43  ;;  %v151_v48 = vsel %vm139_vm5, %v129_v41, %v132_v42  ;;  %v153_v52 = vsel %vm141_vm7, %v135_v37, %v152_v44 }
  0xdd   :  { %v145_v50 = vsel %vm141_vm7, %v129_v41, %v144_v45  ;;  %v150_v51 = vsel %vm140_vm6, %v147_v46, %v149_v47  ;;  %v154_v53 = vsel %vm140_vm6, %v151_v48, %v153_v52 }
  0xde   :  { %v327_v54 = vmul.u32.u64.low %v155_v24, %v150_v51  ;;  %v328_v55 = vmul.u32.u64.high %v155_v24, %v150_v51, %v327_v54  ;;  %v330_v56 = vmul.u32.u64.low %v155_v24, %v154_v53  ;;  %v331_v57 = vmul.u32.u64.high %v155_v24, %v154_v53, %v330_v56 }
  0xdf   :  { %v146_v58 = vsel %vm140_vm6, %v143_v49, %v145_v50 }
  0xe0   :  { %v165_v59 = vadd.s32 1, %v328_v55  ;;  %v162_v60 = vmul.u32 %v155_v24, %v146_v58  ;;  %vm164_vm8 = vc.u32 %v331_v57, %v327_v54  ;;  %v163_v9 = vadd.s32 %v327_v54, %v331_v57 }
  0xe2   :  { %v166_v61 = vsel %vm164_vm8, %v165_v59, %v328_v55 }
  0xe3   :  { %v167_v62 = vadd.s32 %v166_v61, %v162_v60 }
  0xe5   :  { %v168_v63 = vadd.s32 536870912, %v167_v62 }
  0xe7   :  { %v169_v0 = vshrl.u32 %v168_v63, 30 }
  0xe9   :  { %v170_v1 = vshll.u32 %v169_v0, 30  ;;  %v193_v23 = vsub.s32 4, %v169_v0 }
  0xeb   :  { %v171_v2 = vsub.s32 %v167_v62, %v170_v1  ;;  %v194_v26 = vsel %vm109_vm10, %v193_v23, %v169_v0 }
  0xec   :  { %v196_v27 = vsel %vm108_vm11, 0, %v194_v26 }
  0xed   :  { %v173_v3 = vsub.s32 0, %v171_v2  ;;  %v200_v28 = vadd.s32 3, %v196_v27 }
  0xef   :  { %v231_v4 = vmin.u32 %v173_v3, %v171_v2  ;;  %v201_v29 = vand.u32 3, %v200_v28 }
  0xf1   :  { %v175_v5 = vclz %v231_v4  ;;  %vm206_vm12 = vcmp.eq.s32.totalorder %v201_v29, 2  ;;  %vm203_vm13 = vcmp.eq.s32.totalorder %v201_v29, 0  ;;  %vm202_vm14 = vcmp.lt.s32.totalorder %v201_v29, 2 }
  0xf3   :  { %v232_v6 = vadd.s32 4294967294, %v175_v5 }
  0xf5   :  { %vm233_vm9 = vcmp.lt.s32.totalorder %v232_v6, 0 }
  0xf6   :  { %v178_v7 = vsel %vm233_vm9, 0, %v232_v6 }
  0xf7   :  { %v179_v11 = vsub.s32 32, %v178_v7  ;;  %v183_v12 = vsub.s32 4294967266, %v178_v7  ;;  %v180_v13 = vshll.u32 %v171_v2, %v178_v7 }
  0xf9   :  { %v181_v14 = vshrl.u32 %v163_v9, %v179_v11  ;;  %v184_v15 = vadd.s32 127, %v183_v12 }
  0xfb   :  { %v182_v16 = vor.u32 %v181_v14, %v180_v13  ;;  %v185_v17 = vshll.u32 %v184_v15, 23 }
  0xfd   :  { %v186_v18 = vor.u32 4788187, %v185_v17  ;;  %v189_v20 = vcvt.s32.f32 %v182_v16 }
  0xff   :  { %v187_v19 = vand.u32 2147483647, %v186_v18 }
 0x101   :  { %v190_v21 = vmul.f32 %v189_v20, %v187_v19 }
 0x103   :  { %v191_v22 = vxor.u32 2147483648, %v190_v21 }
 0x105   :  { %v192_v24 = vsel %vm109_vm10, %v191_v22, %v190_v21 }
 0x106   :  { %v195_v25 = vsel %vm108_vm11, %v321_v8, %v192_v24 }
 0x107   :  { %254 = vcosq.f32 %v195_v25 }
 0x108   :  { %256 = vsinq.f32 %v195_v25 }
 0x114   :  { %v255_v30 = vpop.eup %254 }
 0x115   :  { %v257_v31 = vpop.eup %256  ;;  %v207_v32 = vxor.u32 2147483648, %v255_v30 }
 0x116   :  { %v204_v33 = vxor.u32 2147483648, %v257_v31 }
 0x117   :  { %v208_v34 = vsel %vm206_vm12, %v207_v32, %v257_v31 }
 0x118   :  { %v205_v10 = vsel %vm203_vm13, %v255_v30, %v204_v33 }
 0x119   :  { %v209_v35 = vsel %vm202_vm14, %v205_v10, %v208_v34 }
 0x11a   :  { %v210_v36 = vsel %vm199_vm15, nan, %v209_v35 }
 0x11b   :  { %211 = vst [vmem:[#allocation2] sm:$0xff] %v210_v36 }
 0x11c   :  { %269 = shalt.err (!%p266_p4)
}
 0x11d   :  { %221 = dma.vmem_to_hbm [thread:$0]  %s219_s2, 128, %s348_s3, [#allocation3]  }
 0x11e   :  { %278 = dma.done.wait [#allocation3], 128  }
 0x11f   :  { %279 = vsyncadd [#allocation3], 4294967168 }
 0x120   :  { %225 = vsyncpa [#allocation3], 1 }

</bundles_post_ra>
